<compile_context>
chip_gen: v7x
topology: tpu7x:2x2x1
jax: 0.10.0
libtpu: 0.0.40
codegen_flags: <defaults>
</compile_context>

<pallas_src>
import jax
import jax.numpy as jnp
from jax.experimental import pallas as pl
from jax.experimental.pallas import tpu as pltpu

# ---- model hyperparameters (small, consistent with the module) -------------
INPUT_DIM = 16
HIDDEN_DIM = 32
OUTPUT_DIM = 16
NUM_HIDDEN_LAYERS = 2
NUM_BLOCKS = 1
BATCH = 16
EPS = 1e-5

MAX_TILE = 2048          # batch samples (lanes) per grid step for large N


# ----------------------------- kernel ---------------------------------------
def residual_mlp_kernel(x_ref, w_ref, v_ref, o_ref):
    """Feature-major forward: every activation is (features, batch_tile)."""
    f32 = jnp.float32
    L = NUM_BLOCKS * NUM_HIDDEN_LAYERS

    def layer_fwd(inp, w, base):
        """Linear (+bias) -> LayerNorm -> ReLU, all in (features, T) layout.

        base / base+1 / base+2 are the bias / gamma / beta columns of v_ref.
        LN statistics are exact f32 sublane reductions (VPU/XLU), not MXU dots.
        """
        h = jnp.dot(w, inp, preferred_element_type=f32) + v_ref[:, base:base + 1]
        mu = jnp.mean(h, axis=0, keepdims=True)          # (1, T)
        d = h - mu
        var = jnp.mean(d * d, axis=0, keepdims=True)     # (1, T)
        h = d * jax.lax.rsqrt(var + EPS) * v_ref[:, base + 1:base + 2] \
            + v_ref[:, base + 2:base + 3]
        return jnp.maximum(h, 0.0)

    # Input projection: (H, IN) @ (IN, T) -> (H, T).  Static slice of a tiny
    # (32, 32) f32 tile; padded columns of w_stack[0] are zero anyway.
    hT = layer_fwd(x_ref[...], w_ref[0][:, :INPUT_DIM], 0)

    # Residual MLP blocks (unrolled; weights stacked along the leading axis).
    layer = 0
    for _ in range(NUM_BLOCKS):
        r = hT
        for _ in range(NUM_HIDDEN_LAYERS):
            hT = layer_fwd(hT, w_ref[1 + layer], 3 * (layer + 1))
            layer += 1
        hT = r + hT

    # Output projection.  Rows >= OUTPUT_DIM of the padded weight/bias are zero.
    fb = 3 * (L + 1)
    yT = jnp.dot(w_ref[L + 1], hT, preferred_element_type=f32) + v_ref[:, fb:fb + 1]
    o_ref[...] = yT[:OUTPUT_DIM, :].astype(o_ref.dtype)


# --------------------------- wrapper / packing -------------------------------
def pack_params(params):
    """Pack the 11 parameter tensors into one weight slab + one lane-dense vector slab."""
    w0, b0, g0, be0, wb, bb, gb, beb, wf, bf = params
    L = wb.shape[0]
    H = HIDDEN_DIM

    # Weight slab (L+2, H, H), feature-major: [pad(W0^T), W1^T..WL^T, pad(Wf^T)].
    w_stack = jnp.zeros((L + 2, H, H), jnp.float32)
    w_stack = w_stack.at[0, :, :INPUT_DIM].set(w0.T)
    w_stack = w_stack.at[1:L + 1].set(jnp.transpose(wb, (0, 2, 1)))
    w_stack = w_stack.at[L + 1, :OUTPUT_DIM, :].set(wf.T)

    # Vector slab (H, 3L+4), lane-dense columns:
    #   [b0, g0, be0, (b, gamma, beta) per hidden layer ..., pad(bf)].
    cols = [b0.reshape(-1), g0.reshape(-1), be0.reshape(-1)]
    for l in range(L):
        cols += [bb[l].reshape(-1), gb[l].reshape(-1), beb[l].reshape(-1)]
    cols.append(jnp.zeros((H,), jnp.float32).at[:OUTPUT_DIM].set(bf.reshape(-1)))
    v_stack = jnp.stack(cols, axis=1).astype(jnp.float32)        # (H, 3L+4)
    return w_stack, v_stack


def _round_up(a, m):
    return -(-a // m) * m


def _choose_tile(n):
    """Lane-dense batch tiling: 128-aligned tiles, >=2 grid steps when n >= 256."""
    if n < 256:
        t = _round_up(max(n, 1), 128)        # single lane-dense step
        return t, t
    t = min(MAX_TILE, _round_up(-(-n // 2), 128))   # >=2 steps feeds both v7x TCs
    return t, _round_up(n, t)


def residual_mlp(x, params):
    w_stack, v_stack = pack_params(params)
    n = x.shape[0]
    tile, n_pad = _choose_tile(n)

    x_t = jnp.asarray(x, jnp.float32).T      # (IN, n): batch on the lane axis
    if n_pad != n:
        x_t = jnp.pad(x_t, ((0, 0), (0, n_pad - n)))

    y_t = pl.pallas_call(
        residual_mlp_kernel,
        out_shape=jax.ShapeDtypeStruct((OUTPUT_DIM, n_pad), x.dtype),
        grid_spec=pltpu.PrefetchScalarGridSpec(
            num_scalar_prefetch=0,
            grid=(n_pad // tile,),
            in_specs=[
                pl.BlockSpec((INPUT_DIM, tile), lambda i: (0, i)),     # x^T tile
                pl.BlockSpec(w_stack.shape, lambda i: (0, 0, 0)),      # weight slab (resident)
                pl.BlockSpec(v_stack.shape, lambda i: (0, 0)),         # vector slab (resident)
            ],
            out_specs=pl.BlockSpec((OUTPUT_DIM, tile), lambda i: (0, i)),
        ),
        compiler_params=pltpu.CompilerParams(
            dimension_semantics=("parallel",),
            vmem_limit_bytes=32 * 1024 * 1024,   # ample headroom on every generation
        ),
    )(x_t, w_stack, v_stack)

    return y_t[:, :n].T                      # back to (n, OUTPUT_DIM)


# ----------------------- params / pure-JAX reference -------------------------
def init_params(key):
    L = NUM_BLOCKS * NUM_HIDDEN_LAYERS
    ks = jax.random.split(key, 10)
    s_in = 1.0 / jnp.sqrt(INPUT_DIM)
    s_h = 1.0 / jnp.sqrt(HIDDEN_DIM)
    w0 = jax.random.uniform(ks[0], (INPUT_DIM, HIDDEN_DIM), jnp.float32, -s_in, s_in)
    b0 = jax.random.uniform(ks[1], (1, HIDDEN_DIM), jnp.float32, -s_in, s_in)
    g0 = 1.0 + 0.1 * jax.random.normal(ks[2], (1, HIDDEN_DIM), jnp.float32)
    be0 = 0.1 * jax.random.normal(ks[3], (1, HIDDEN_DIM), jnp.float32)
    wb = jax.random.uniform(ks[4], (L, HIDDEN_DIM, HIDDEN_DIM), jnp.float32, -s_h, s_h)
    bb = jax.random.uniform(ks[5], (L, 1, HIDDEN_DIM), jnp.float32, -s_h, s_h)
    gb = 1.0 + 0.1 * jax.random.normal(ks[6], (L, 1, HIDDEN_DIM), jnp.float32)
    beb = 0.1 * jax.random.normal(ks[7], (L, 1, HIDDEN_DIM), jnp.float32)
    wf = jax.random.uniform(ks[8], (HIDDEN_DIM, OUTPUT_DIM), jnp.float32, -s_h, s_h)
    bf = jax.random.uniform(ks[9], (1, OUTPUT_DIM), jnp.float32, -s_h, s_h)
    return (w0, b0, g0, be0, wb, bb, gb, beb, wf, bf)


def _layernorm(h, g, b):
    mu = jnp.mean(h, axis=-1, keepdims=True)
    var = jnp.mean((h - mu) ** 2, axis=-1, keepdims=True)
    return (h - mu) * jax.lax.rsqrt(var + EPS) * g + b


def residual_mlp_ref(x, params):
    """Pure-JAX reference mirroring the PyTorch module."""
    w0, b0, g0, be0, wb, bb, gb, beb, wf, bf = params
    h = jnp.maximum(_layernorm(x @ w0 + b0, g0, be0), 0.0)
    idx = 0
    for _ in range(NUM_BLOCKS):
        r = h
        for _ in range(NUM_HIDDEN_LAYERS):
            h = jnp.maximum(_layernorm(h @ wb[idx] + bb[idx], gb[idx], beb[idx]), 0.0)
            idx += 1
        h = r + h
    return h @ wf + bf


if __name__ == "__main__":
    key = jax.random.PRNGKey(0)
    kx, kp = jax.random.split(key)
    params = init_params(kp)

    # Primary small-shape check (single lane-dense grid step).
    x = jax.random.normal(kx, (BATCH, INPUT_DIM), jnp.float32)
    out = jax.block_until_ready(residual_mlp(x, params))
    ref = residual_mlp_ref(x, params)
    assert out.shape == (BATCH, OUTPUT_DIM)
    assert jnp.allclose(out, ref, atol=1e-4, rtol=1e-4), "mismatch vs pure-JAX reference"

    # Secondary check exercising the multi-step (padded, >=2 parallel tiles) path.
    x2 = jax.random.normal(jax.random.PRNGKey(1), (600, INPUT_DIM), jnp.float32)
    out2 = jax.block_until_ready(residual_mlp(x2, params))
    ref2 = residual_mlp_ref(x2, params)
    assert out2.shape == (600, OUTPUT_DIM)
    assert jnp.allclose(out2, ref2, atol=1e-4, rtol=1e-4), "mismatch (tiled path)"

    print("KERNEL_OK")
</pallas_src>

<mosaic_0001>
module attributes {stable_mosaic.version = 11 : i64} {
  func.func @residual_mlp_kernel(%arg0: i32, %arg1: memref<16x128xf32, #tpu.memory_space<vmem>>, %arg2: memref<4x32x32xf32, #tpu.memory_space<vmem>>, %arg3: memref<32x10xf32, #tpu.memory_space<vmem>>, %arg4: memref<16x128xf32, #tpu.memory_space<vmem>>) attributes {dimension_semantics = [#tpu.dimension_semantics<parallel>], iteration_bounds = array<i64: 1>, scalar_prefetch = 0 : i64, scratch_operands = 0 : i64, tpu.core_type = #tpu.core_type<tc>, window_params = [{transform_indices = @transform_0, window_bounds = array<i64: 16, 128>}, {pipeline_mode = #tpu.pipeline_mode<synchronous>, transform_indices = @transform_1, window_bounds = array<i64: 4, 32, 32>}, {pipeline_mode = #tpu.pipeline_mode<synchronous>, transform_indices = @transform_2, window_bounds = array<i64: 32, 10>}, {transform_indices = @transform_3, window_bounds = array<i64: 16, 128>}]} {
    %c0 = arith.constant 0 : index
    %c0_0 = arith.constant 0 : index
    %0 = vector.load %arg1[%c0, %c0_0] : memref<16x128xf32, #tpu.memory_space<vmem>>, vector<16x128xf32>
    %c0_1 = arith.constant 0 : index
    %c0_2 = arith.constant 0 : index
    %c0_3 = arith.constant 0 : index
    %1 = vector.load %arg2[%c0_1, %c0_2, %c0_3] : memref<4x32x32xf32, #tpu.memory_space<vmem>>, vector<1x32x32xf32>
    %2 = vector.shape_cast %1 : vector<1x32x32xf32> to vector<32x32xf32>
    %3 = vector.extract_strided_slice %2 {offsets = [0, 0], sizes = [32, 16], strides = [1, 1]} : vector<32x32xf32> to vector<32x16xf32>
    %cst = arith.constant dense<0.000000e+00> : vector<32x128xf32>
    %4 = tpu.matmul %3, %0, %cst {dimension_numbers = #tpu.dot_dimension_numbers<[1], [0], [0], [1], [0, 0, 1, 1], [], []>} : vector<32x16xf32>, vector<16x128xf32>, vector<32x128xf32> -> vector<32x128xf32>
    %c0_4 = arith.constant 0 : index
    %c0_5 = arith.constant 0 : index
    %5 = vector.load %arg3[%c0_4, %c0_5] : memref<32x10xf32, #tpu.memory_space<vmem>>, vector<32x1xf32>
    %6 = vector.broadcast %5 : vector<32x1xf32> to vector<32x128xf32>
    %7 = arith.addf %4, %6 : vector<32x128xf32>
    %cst_6 = arith.constant dense<0.000000e+00> : vector<128xf32>
    %8 = vector.multi_reduction <add>, %7, %cst_6 [0] : vector<32x128xf32> to vector<128xf32>
    %9 = vector.shape_cast %8 : vector<128xf32> to vector<1x128xf32>
    %cst_7 = arith.constant 3.200000e+01 : f32
    %10 = vector.broadcast %cst_7 : f32 to vector<1x128xf32>
    %11 = arith.divf %9, %10 : vector<1x128xf32>
    %12 = vector.broadcast %11 : vector<1x128xf32> to vector<32x128xf32>
    %13 = arith.subf %7, %12 : vector<32x128xf32>
    %14 = arith.mulf %13, %13 : vector<32x128xf32>
    %cst_8 = arith.constant dense<0.000000e+00> : vector<128xf32>
    %15 = vector.multi_reduction <add>, %14, %cst_8 [0] : vector<32x128xf32> to vector<128xf32>
    %16 = vector.shape_cast %15 : vector<128xf32> to vector<1x128xf32>
    %cst_9 = arith.constant 3.200000e+01 : f32
    %17 = vector.broadcast %cst_9 : f32 to vector<1x128xf32>
    %18 = arith.divf %16, %17 : vector<1x128xf32>
    %cst_10 = arith.constant 9.99999974E-6 : f32
    %19 = vector.broadcast %cst_10 : f32 to vector<1x128xf32>
    %20 = arith.addf %18, %19 : vector<1x128xf32>
    %21 = math.rsqrt %20 : vector<1x128xf32>
    %22 = vector.broadcast %21 : vector<1x128xf32> to vector<32x128xf32>
    %23 = arith.mulf %13, %22 : vector<32x128xf32>
    %c0_11 = arith.constant 0 : index
    %c1 = arith.constant 1 : index
    %24 = vector.load %arg3[%c0_11, %c1] : memref<32x10xf32, #tpu.memory_space<vmem>>, vector<32x1xf32>
    %25 = vector.broadcast %24 : vector<32x1xf32> to vector<32x128xf32>
    %26 = arith.mulf %23, %25 : vector<32x128xf32>
    %c0_12 = arith.constant 0 : index
    %c2 = arith.constant 2 : index
    %27 = vector.load %arg3[%c0_12, %c2] : memref<32x10xf32, #tpu.memory_space<vmem>>, vector<32x1xf32>
    %28 = vector.broadcast %27 : vector<32x1xf32> to vector<32x128xf32>
    %29 = arith.addf %26, %28 : vector<32x128xf32>
    %cst_13 = arith.constant 0.000000e+00 : f32
    %30 = vector.broadcast %cst_13 : f32 to vector<32x128xf32>
    %31 = arith.maximumf %29, %30 : vector<32x128xf32>
    %c1_14 = arith.constant 1 : index
    %c0_15 = arith.constant 0 : index
    %c0_16 = arith.constant 0 : index
    %32 = vector.load %arg2[%c1_14, %c0_15, %c0_16] : memref<4x32x32xf32, #tpu.memory_space<vmem>>, vector<1x32x32xf32>
    %33 = vector.shape_cast %32 : vector<1x32x32xf32> to vector<32x32xf32>
    %cst_17 = arith.constant dense<0.000000e+00> : vector<32x128xf32>
    %34 = tpu.matmul %33, %31, %cst_17 {dimension_numbers = #tpu.dot_dimension_numbers<[1], [0], [0], [1], [0, 0, 1, 1], [], []>} : vector<32x32xf32>, vector<32x128xf32>, vector<32x128xf32> -> vector<32x128xf32>
    %c0_18 = arith.constant 0 : index
    %c3 = arith.constant 3 : index
    %35 = vector.load %arg3[%c0_18, %c3] : memref<32x10xf32, #tpu.memory_space<vmem>>, vector<32x1xf32>
    %36 = vector.broadcast %35 : vector<32x1xf32> to vector<32x128xf32>
    %37 = arith.addf %34, %36 : vector<32x128xf32>
    %cst_19 = arith.constant dense<0.000000e+00> : vector<128xf32>
    %38 = vector.multi_reduction <add>, %37, %cst_19 [0] : vector<32x128xf32> to vector<128xf32>
    %39 = vector.shape_cast %38 : vector<128xf32> to vector<1x128xf32>
    %cst_20 = arith.constant 3.200000e+01 : f32
    %40 = vector.broadcast %cst_20 : f32 to vector<1x128xf32>
    %41 = arith.divf %39, %40 : vector<1x128xf32>
    %42 = vector.broadcast %41 : vector<1x128xf32> to vector<32x128xf32>
    %43 = arith.subf %37, %42 : vector<32x128xf32>
    %44 = arith.mulf %43, %43 : vector<32x128xf32>
    %cst_21 = arith.constant dense<0.000000e+00> : vector<128xf32>
    %45 = vector.multi_reduction <add>, %44, %cst_21 [0] : vector<32x128xf32> to vector<128xf32>
    %46 = vector.shape_cast %45 : vector<128xf32> to vector<1x128xf32>
    %cst_22 = arith.constant 3.200000e+01 : f32
    %47 = vector.broadcast %cst_22 : f32 to vector<1x128xf32>
    %48 = arith.divf %46, %47 : vector<1x128xf32>
    %cst_23 = arith.constant 9.99999974E-6 : f32
    %49 = vector.broadcast %cst_23 : f32 to vector<1x128xf32>
    %50 = arith.addf %48, %49 : vector<1x128xf32>
    %51 = math.rsqrt %50 : vector<1x128xf32>
    %52 = vector.broadcast %51 : vector<1x128xf32> to vector<32x128xf32>
    %53 = arith.mulf %43, %52 : vector<32x128xf32>
    %c0_24 = arith.constant 0 : index
    %c4 = arith.constant 4 : index
    %54 = vector.load %arg3[%c0_24, %c4] : memref<32x10xf32, #tpu.memory_space<vmem>>, vector<32x1xf32>
    %55 = vector.broadcast %54 : vector<32x1xf32> to vector<32x128xf32>
    %56 = arith.mulf %53, %55 : vector<32x128xf32>
    %c0_25 = arith.constant 0 : index
    %c5 = arith.constant 5 : index
    %57 = vector.load %arg3[%c0_25, %c5] : memref<32x10xf32, #tpu.memory_space<vmem>>, vector<32x1xf32>
    %58 = vector.broadcast %57 : vector<32x1xf32> to vector<32x128xf32>
    %59 = arith.addf %56, %58 : vector<32x128xf32>
    %cst_26 = arith.constant 0.000000e+00 : f32
    %60 = vector.broadcast %cst_26 : f32 to vector<32x128xf32>
    %61 = arith.maximumf %59, %60 : vector<32x128xf32>
    %c2_27 = arith.constant 2 : index
    %c0_28 = arith.constant 0 : index
    %c0_29 = arith.constant 0 : index
    %62 = vector.load %arg2[%c2_27, %c0_28, %c0_29] : memref<4x32x32xf32, #tpu.memory_space<vmem>>, vector<1x32x32xf32>
    %63 = vector.shape_cast %62 : vector<1x32x32xf32> to vector<32x32xf32>
    %cst_30 = arith.constant dense<0.000000e+00> : vector<32x128xf32>
    %64 = tpu.matmul %63, %61, %cst_30 {dimension_numbers = #tpu.dot_dimension_numbers<[1], [0], [0], [1], [0, 0, 1, 1], [], []>} : vector<32x32xf32>, vector<32x128xf32>, vector<32x128xf32> -> vector<32x128xf32>
    %c0_31 = arith.constant 0 : index
    %c6 = arith.constant 6 : index
    %65 = vector.load %arg3[%c0_31, %c6] : memref<32x10xf32, #tpu.memory_space<vmem>>, vector<32x1xf32>
    %66 = vector.broadcast %65 : vector<32x1xf32> to vector<32x128xf32>
    %67 = arith.addf %64, %66 : vector<32x128xf32>
    %cst_32 = arith.constant dense<0.000000e+00> : vector<128xf32>
    %68 = vector.multi_reduction <add>, %67, %cst_32 [0] : vector<32x128xf32> to vector<128xf32>
    %69 = vector.shape_cast %68 : vector<128xf32> to vector<1x128xf32>
    %cst_33 = arith.constant 3.200000e+01 : f32
    %70 = vector.broadcast %cst_33 : f32 to vector<1x128xf32>
    %71 = arith.divf %69, %70 : vector<1x128xf32>
    %72 = vector.broadcast %71 : vector<1x128xf32> to vector<32x128xf32>
    %73 = arith.subf %67, %72 : vector<32x128xf32>
    %74 = arith.mulf %73, %73 : vector<32x128xf32>
    %cst_34 = arith.constant dense<0.000000e+00> : vector<128xf32>
    %75 = vector.multi_reduction <add>, %74, %cst_34 [0] : vector<32x128xf32> to vector<128xf32>
    %76 = vector.shape_cast %75 : vector<128xf32> to vector<1x128xf32>
    %cst_35 = arith.constant 3.200000e+01 : f32
    %77 = vector.broadcast %cst_35 : f32 to vector<1x128xf32>
    %78 = arith.divf %76, %77 : vector<1x128xf32>
    %cst_36 = arith.constant 9.99999974E-6 : f32
    %79 = vector.broadcast %cst_36 : f32 to vector<1x128xf32>
    %80 = arith.addf %78, %79 : vector<1x128xf32>
    %81 = math.rsqrt %80 : vector<1x128xf32>
    %82 = vector.broadcast %81 : vector<1x128xf32> to vector<32x128xf32>
    %83 = arith.mulf %73, %82 : vector<32x128xf32>
    %c0_37 = arith.constant 0 : index
    %c7 = arith.constant 7 : index
    %84 = vector.load %arg3[%c0_37, %c7] : memref<32x10xf32, #tpu.memory_space<vmem>>, vector<32x1xf32>
    %85 = vector.broadcast %84 : vector<32x1xf32> to vector<32x128xf32>
    %86 = arith.mulf %83, %85 : vector<32x128xf32>
    %c0_38 = arith.constant 0 : index
    %c8 = arith.constant 8 : index
    %87 = vector.load %arg3[%c0_38, %c8] : memref<32x10xf32, #tpu.memory_space<vmem>>, vector<32x1xf32>
    %88 = vector.broadcast %87 : vector<32x1xf32> to vector<32x128xf32>
    %89 = arith.addf %86, %88 : vector<32x128xf32>
    %cst_39 = arith.constant 0.000000e+00 : f32
    %90 = vector.broadcast %cst_39 : f32 to vector<32x128xf32>
    %91 = arith.maximumf %89, %90 : vector<32x128xf32>
    %92 = arith.addf %31, %91 : vector<32x128xf32>
    %c3_40 = arith.constant 3 : index
    %c0_41 = arith.constant 0 : index
    %c0_42 = arith.constant 0 : index
    %93 = vector.load %arg2[%c3_40, %c0_41, %c0_42] : memref<4x32x32xf32, #tpu.memory_space<vmem>>, vector<1x32x32xf32>
    %94 = vector.shape_cast %93 : vector<1x32x32xf32> to vector<32x32xf32>
    %cst_43 = arith.constant dense<0.000000e+00> : vector<32x128xf32>
    %95 = tpu.matmul %94, %92, %cst_43 {dimension_numbers = #tpu.dot_dimension_numbers<[1], [0], [0], [1], [0, 0, 1, 1], [], []>} : vector<32x32xf32>, vector<32x128xf32>, vector<32x128xf32> -> vector<32x128xf32>
    %c0_44 = arith.constant 0 : index
    %c9 = arith.constant 9 : index
    %96 = vector.load %arg3[%c0_44, %c9] : memref<32x10xf32, #tpu.memory_space<vmem>>, vector<32x1xf32>
    %97 = vector.broadcast %96 : vector<32x1xf32> to vector<32x128xf32>
    %98 = arith.addf %95, %97 : vector<32x128xf32>
    %99 = vector.extract_strided_slice %98 {offsets = [0, 0], sizes = [16, 128], strides = [1, 1]} : vector<32x128xf32> to vector<16x128xf32>
    %c0_45 = arith.constant 0 : index
    %c0_46 = arith.constant 0 : index
    %100 = vector.load %arg4[%c0_45, %c0_46] : memref<16x128xf32, #tpu.memory_space<vmem>>, vector<16x128xf32>
    tpu.vector_store %arg4[%c0_45, %c0_46], %99 {strides = array<i32>} : memref<16x128xf32, #tpu.memory_space<vmem>>, vector<16x128xf32>,
    return
  }
  func.func @transform_0(%arg0: i32) -> (i32, i32) {
    %c0_i32 = arith.constant 0 : i32
    %c0_i32_0 = arith.constant 0 : i32
    return %c0_i32, %arg0 : i32, i32
  }
  func.func @transform_1(%arg0: i32) -> (i32, i32, i32) {
    %c0_i32 = arith.constant 0 : i32
    %c0_i32_0 = arith.constant 0 : i32
    %c0_i32_1 = arith.constant 0 : i32
    %c0_i32_2 = arith.constant 0 : i32
    return %c0_i32, %c0_i32_0, %c0_i32_1 : i32, i32, i32
  }
  func.func @transform_2(%arg0: i32) -> (i32, i32) {
    %c0_i32 = arith.constant 0 : i32
    %c0_i32_0 = arith.constant 0 : i32
    %c0_i32_1 = arith.constant 0 : i32
    return %c0_i32, %c0_i32_0 : i32, i32
  }
  func.func @transform_3(%arg0: i32) -> (i32, i32) {
    %c0_i32 = arith.constant 0 : i32
    %c0_i32_0 = arith.constant 0 : i32
    return %c0_i32, %arg0 : i32, i32
  }
}

</mosaic_0001>

<bundles_post_ra>
// kernel: tpu_custom_call.1
= control target key start
LH: loop header
LB: loop body
LE: loop exit
PB: predicated region body
PF: predicated region fallthrough
CT: control target
= control target key end

     0   :  { %8 = vsyncpa [#allocation3], 0  ;;  %s1158_s0 = inlined_call_operand.vmem [shape: f32[16,128], index: 0, kind: input, shape index: {}]   ;;  %s1159_s1 = inlined_call_operand.hbm [shape: f32[4,32,32], index: 1, kind: input, shape index: {}]   ;;  %s1160_s2 = inlined_call_operand.vmem [shape: f32[32,10], index: 2, kind: input, shape index: {}]   ;;  %s1161_s3 = inlined_call_operand.hbm [shape: f32[16,128], index: 3, kind: output, shape index: {}]  }
   0x1   :  { %9 = vsyncpa [#allocation4], 0  ;;  %s986_s12 = smov [#allocation2]   ;;  %s938_s16 = scalar_lea.hbm %s1159_s1, 2048 }
   0x2   :  { %s17_s13 = sshll.u32 %s986_s12, 4  ;;  %p939_p0 = scmp.ne.s32.totalorder %s1159_s1, %s938_s16  ;;  %s18_s13 = int_to_ptr.vmem [resolvable:$true] %s17_s13 }
   0x3   :  { %p942_p1 = scmp.lt.u32.totalorder %s938_s16, %s1159_s1 }
   0x5   :  { %p944_p2 = pnand %p942_p1, %p939_p0 }
   0x7   :  { %947 = shalt.err (!%p944_p2)
}
   0x8   :  { %s948_s21 = scalar_lea.vmem %s18_s13, 2048  ;;  %p953_p4 = scmp.lt.s32.totalorder %s18_s13, %s18_s13 }
   0x9   :  { %p949_p3 = scmp.ne.s32.totalorder %s18_s13, %s948_s21  ;;  %p954_p5 = scmp.lt.s32.totalorder %s948_s21, %s948_s21 }
   0xb   :  { %p955_p6 = por %p954_p5, %p953_p4 }
   0xd   :  { %p956_p7 = pnand %p955_p6, %p949_p3 }
   0xf   :  { %959 = shalt.err (!%p956_p7)
}
  0x10   :  { %s987_s22 = smov 128   ;;  %s988_s23 = smov 8  }
  0x11   :  { %23 = dma.hbm_to_vmem [thread:$0]  %s1159_s1, 2048, %s18_s13, [#allocation3], %s987_s22, %s987_s22, %s988_s23  }
  0x12   :  { %982 = dma.done.wait [#allocation3], 2048  }
  0x13   :  { %983 = vsyncadd [#allocation3], 4294965248  ;;  %v989_v0 = vmov 0   ;;  %vm59_vm0 = vcmask 130048   ;;  %v29_v1 = vld [vmem:[%s1158_s0] sm:$0xff]  ;;  %v30_v2 = vld [vmem:[%s1158_s0 + $0x8] sm:$0xff] }
  0x14   :  { %906 = vset.pattern.permute.xlu0 %v989_v0  ;;  %907 = vset.pattern.permute.xlu1 %v989_v0  ;;  %v31_v3 = vld [vmem:[#allocation2] sm:$0xff]  ;;  %v864_v4 = vpack.c.bf16 %v30_v2, %v29_v1  ;;  %v1050_v6 = vld [vmem:[%s1160_s2 + $0x10] sm:$0xff]  ;;  %v32_v7 = vld [vmem:[#allocation2 + $0x8] sm:$0xff]  ;;  %v990_v12 = vmov 1   ;;  %v991_v13 = vmov 2   ;;  %vm257_vm1 = vcmask 261120  }
  0x15   :  { %816 = vmatprep.mubr.msk.f32.mxu0 %vm59_vm0, %v31_v3  ;;  %v1045_v5 = vld [vmem:[%s1160_s2] sm:$0xff]  ;;  %51 = vperm.xlu1 %907, %v1050_v6   ;;  %v1057_v8 = vld [vmem:[%s1160_s2 + $0x8] sm:$0xff]  ;;  %v33_v9 = vld [vmem:[#allocation2 + $0x10] sm:$0xff]  ;;  %v992_v15 = vmov 3   ;;  %v993_v16 = vmov 4   ;;  %v994_v17 = vmov 5  }
  0x16   :  { %865 = vmatprep.subr.bf16.mxu0 %v864_v4  ;;  %41 = vperm.xlu0 %906, %v1045_v5   ;;  %v1062_v10 = vld [vmem:[%s1160_s2 + $0x18] sm:$0xff]  ;;  %v237_v14 = vld [vmem:[#allocation2 + $0x20] sm:$0xff]  ;;  %s999_s2 = smov [#allocation5]  }
  0x17   :  { %867 = vmatpush3.bf16.msra.mxu0 %v864_v4  ;;  %v34_v11 = vld [vmem:[#allocation2 + $0x18] sm:$0xff]  ;;  %830 = vmatprep.mubr.msk.f32.mxu1 %vm257_vm1, %v237_v14  ;;  %s754_s9 = sshll.u32 %s999_s2, 4  ;;  %s755_s9 = int_to_ptr.vmem [resolvable:$true] %s754_s9 }
  0x18   :  { %s960_s10 = scalar_lea.vmem %s755_s9, 256  ;;  %p965_p9 = scmp.lt.s32.totalorder %s755_s9, %s755_s9 }
  0x19   :  { %56 = vperm.xlu1 %907, %v1062_v10   ;;  %p961_p8 = scmp.ne.s32.totalorder %s755_s9, %s960_s10  ;;  %p966_p10 = scmp.lt.s32.totalorder %s960_s10, %s960_s10 }
  0x1a   :  { %817 = vmatmul.mubr.msk.f32.vlgmr.msra.gmra.mrb[0].mxu0 %vm59_vm0, %v32_v7  ;;  %46 = vperm.xlu0 %906, %v1057_v8  }
  0x1b   :  { %819 = vmatprep.mubr.msk.f32.mxu0 %vm59_vm0, %v33_v9  ;;  %p967_p11 = por %p966_p10, %p965_p9 }
  0x1d   :  { %909 = vset.pattern.permute.xlu1 %v990_v12  ;;  %p968_p12 = pnand %p967_p11, %p961_p8 }
  0x1e   :  { %820 = vmatmul.mubr.msk.f32.gmra.mrb[2].mxu0 %vm59_vm0, %v34_v11  ;;  %908 = vset.pattern.permute.xlu0 %v990_v12 }
  0x1f   :  { %193 = vperm.xlu0 %908, %v1045_v5   ;;  %197 = vperm.xlu1 %909, %v1057_v8  }
  0x23   :  { %911 = vset.pattern.permute.xlu0 %v991_v13  ;;  %910 = vset.pattern.permute.xlu1 %v991_v13 }
  0x24   :  { %217 = vperm.xlu0 %911, %v1057_v8   ;;  %213 = vperm.xlu1 %910, %v1045_v5  }
  0x28   :  { %221 = vperm.xlu0 %911, %v1050_v6   ;;  %912 = vset.pattern.permute.xlu1 %v990_v12 }
  0x29   :  { %201 = vperm.xlu1 %912, %v1050_v6  }
  0x2c   :  { %914 = vset.pattern.permute.xlu0 %v992_v15 }
  0x2d   :  { %205 = vperm.xlu1 %912, %v1062_v10   ;;  %242 = vperm.xlu0 %914, %v1045_v5  }
  0x31   :  { %913 = vset.pattern.permute.xlu1 %v991_v13  ;;  %254 = vperm.xlu0 %914, %v1062_v10  }
  0x32   :  { %225 = vperm.xlu1 %913, %v1062_v10  }
  0x35   :  { %917 = vset.pattern.permute.xlu0 %v993_v16 }
  0x36   :  { %915 = vset.pattern.permute.xlu1 %v992_v15  ;;  %394 = vperm.xlu0 %917, %v1057_v8  }
  0x37   :  { %246 = vperm.xlu1 %915, %v1057_v8  }
  0x3a   :  { %398 = vperm.xlu0 %917, %v1050_v6  }
  0x3b   :  { %250 = vperm.xlu1 %915, %v1050_v6  }
  0x3e   :  { %920 = vset.pattern.permute.xlu0 %v994_v17 }
  0x3f   :  { %916 = vset.pattern.permute.xlu1 %v993_v16  ;;  %418 = vperm.xlu0 %920, %v1050_v6  }
  0x40   :  { %390 = vperm.xlu1 %916, %v1045_v5  }
  0x44   :  { %918 = vset.pattern.permute.xlu1 %v994_v17 }
  0x45   :  { %410 = vperm.xlu1 %918, %v1045_v5  }
  0x49   :  { %414 = vperm.xlu1 %918, %v1057_v8  }
  0x4d   :  { %919 = vset.pattern.permute.xlu1 %v993_v16 }
  0x4e   :  { %402 = vperm.xlu1 %919, %v1062_v10  }
  0x52   :  { %921 = vset.pattern.permute.xlu1 %v994_v17 }
  0x53   :  { %422 = vperm.xlu1 %921, %v1062_v10  }
  0x94   :  { %v52_v20 = vpop.permute.xlu1 %51 }
  0x95   :  { %v42_v18 = vpop.permute.xlu0 %41 }
  0x98   :  { %v57_v27 = vpop.permute.xlu1 %56 }
  0x99   :  { %v47_v19 = vpop.permute.xlu0 %46 }
  0x9e   :  { %v198_v53 = vpop.permute.xlu1 %197  ;;  %v194_v62 = vpop.permute.xlu0 %193 }
  0xa3   :  { %v214_v58 = vpop.permute.xlu1 %213  ;;  %v218_v0 = vpop.permute.xlu0 %217 }
  0xa7   :  { %v222_v11 = vpop.permute.xlu0 %221 }
  0xa8   :  { %v202_v61 = vpop.permute.xlu1 %201 }
  0xac   :  { %v206_v63 = vpop.permute.xlu1 %205 }
  0xb1   :  { %v226_v9 = vpop.permute.xlu1 %225 }
  0xed   :  { %v818_v21 = vpop.f32.mrb[0].mxu0 }
  0xee   :  { %v144_v22 = vadd.f32 %v818_v21, %v47_v19  ;;  %v138_v23 = vpop.f32.mrb[1].mxu0 }
  0xef   :  { %v139_v24 = vadd.f32 %v138_v23, %v42_v18 }
  0xf1   :  { %v157_v25 = vadd.f32 %v144_v22, %v139_v24  ;;  %v821_v26 = vpop.f32.mrb[2].mxu0 }
  0xf2   :  { %v148_v28 = vpop.f32.mrb[3].mxu0  ;;  %v154_v30 = vadd.f32 %v821_v26, %v57_v27  ;;  %v238_v26 = vld [vmem:[#allocation2 + $0x28] sm:$0xff]  ;;  %v239_v27 = vld [vmem:[#allocation2 + $0x30] sm:$0xff] }
  0xf3   :  { %v149_v29 = vadd.f32 %v148_v28, %v52_v20  ;;  %v240_v28 = vld [vmem:[#allocation2 + $0x38] sm:$0xff] }
  0xf5   :  { %v158_v31 = vadd.f32 %v157_v25, %v149_v29 }
  0xf7   :  { %v159_v32 = vadd.f32 %v158_v31, %v154_v30  ;;  %v996_v31 = vmov 7  }
  0xf9   :  { %v160_v33 = vrot.slane %v159_v32, 4 }
  0xfb   :  { %v161_v34 = vadd.f32 %v160_v33, %v159_v32  ;;  %v997_v32 = vmov 8   ;;  %v247_v33 = vpop.permute.xlu1 %246 }
  0xfd   :  { %v162_v35 = vrot.slane %v161_v34, 2 }
  0xff   :  { %v163_v36 = vadd.f32 %v162_v35, %v161_v34  ;;  %v243_v34 = vpop.permute.xlu0 %242 }
 0x101   :  { %v164_v37 = vrot.slane %v163_v36, 1 }
 0x103   :  { %v165_v38 = vadd.f32 %v164_v37, %v163_v36 }
 0x105   :  { %v167_v39 = vmul.f32 0.03125, %v165_v38 }
 0x107   :  { %v170_v40 = vsub.f32 %v149_v29, %v167_v39  ;;  %v171_v41 = vsub.f32 %v154_v30, %v167_v39  ;;  %v168_v42 = vsub.f32 %v139_v24, %v167_v39  ;;  %v169_v43 = vsub.f32 %v144_v22, %v167_v39  ;;  %v434_v29 = vld [vmem:[#allocation2 + $0x40] sm:$0xff]  ;;  %v251_v39 = vpop.permute.xlu1 %250 }
 0x108   :  { %844 = vmatprep.mubr.msk.f32.mxu0 %vm257_vm1, %v434_v29  ;;  %v995_v30 = vmov 6  }
 0x109   :  { %v172_v44 = vmul.f32 %v168_v42, %v168_v42  ;;  %v173_v45 = vmul.f32 %v169_v43, %v169_v43  ;;  %v174_v46 = vmul.f32 %v170_v40, %v170_v40  ;;  %v175_v48 = vmul.f32 %v171_v41, %v171_v41  ;;  %922 = vset.pattern.permute.xlu1 %v995_v30 }
 0x10a   :  { %923 = vset.pattern.permute.xlu0 %v995_v30  ;;  %439 = vperm.xlu1 %922, %v1045_v5  }
 0x10b   :  { %v176_v47 = vadd.f32 %v173_v45, %v172_v44  ;;  %443 = vperm.xlu0 %923, %v1057_v8  }
 0x10d   :  { %v177_v49 = vadd.f32 %v176_v47, %v174_v46 }
 0x10e   :  { %447 = vperm.xlu1 %922, %v1050_v6  }
 0x10f   :  { %v178_v50 = vadd.f32 %v177_v49, %v175_v48  ;;  %924 = vset.pattern.permute.xlu0 %v996_v31 }
 0x110   :  { %586 = vperm.xlu0 %924, %v1045_v5  }
 0x111   :  { %v179_v51 = vrot.slane %v178_v50, 4 }
 0x112   :  { %451 = vperm.xlu1 %922, %v1062_v10  }
 0x113   :  { %v180_v52 = vadd.f32 %v179_v51, %v178_v50 }
 0x114   :  { %927 = vset.pattern.permute.xlu0 %v997_v32 }
 0x115   :  { %v181_v54 = vrot.slane %v180_v52, 2  ;;  %610 = vperm.xlu0 %927, %v1057_v8  }
 0x116   :  { %925 = vset.pattern.permute.xlu1 %v996_v31 }
 0x117   :  { %v182_v55 = vadd.f32 %v181_v54, %v180_v52  ;;  %590 = vperm.xlu1 %925, %v1057_v8  }
 0x119   :  { %v183_v56 = vrot.slane %v182_v55, 1  ;;  %614 = vperm.xlu0 %927, %v1050_v6  }
 0x11b   :  { %v184_v57 = vadd.f32 %v183_v56, %v182_v55  ;;  %926 = vset.pattern.permute.xlu1 %v997_v32 }
 0x11c   :  { %606 = vperm.xlu1 %926, %v1045_v5  }
 0x11d   :  { %v185_v59 = vmul.f32 0.03125, %v184_v57 }
 0x11f   :  { %v186_v60 = vadd.f32 1e-05, %v185_v59 }
 0x120   :  { %928 = vset.pattern.permute.xlu1 %v996_v31 }
 0x121   :  { %932 = vrsqrt.f32 %v186_v60  ;;  %594 = vperm.xlu1 %928, %v1050_v6  }
 0x125   :  { %598 = vperm.xlu1 %928, %v1062_v10  }
 0x129   :  { %929 = vset.pattern.permute.xlu1 %v997_v32 }
 0x12a   :  { %618 = vperm.xlu1 %929, %v1062_v10  }
 0x12b   :  { %v933_v1 = vpop.eup %932 }
 0x12c   :  { %v189_v2 = vmul.f32 %v933_v1, %v169_v43  ;;  %v190_v3 = vmul.f32 %v933_v1, %v170_v40  ;;  %v188_v4 = vmul.f32 %v933_v1, %v168_v42  ;;  %v191_v7 = vmul.f32 %v933_v1, %v171_v41  ;;  %v255_v42 = vpop.permute.xlu0 %254 }
 0x12e   :  { %v209_v12 = vmul.f32 %v198_v53, %v189_v2  ;;  %v210_v13 = vmul.f32 %v202_v61, %v190_v3  ;;  %v208_v14 = vmul.f32 %v194_v62, %v188_v4  ;;  %v211_v15 = vmul.f32 %v206_v63, %v191_v7  ;;  %v391_v3 = vpop.permute.xlu1 %390 }
 0x130   :  { %v1090_v16 = vadd.f32 %v214_v58, %v208_v14  ;;  %v1092_v17 = vadd.f32 %v218_v0, %v209_v12  ;;  %v1094_v18 = vadd.f32 %v226_v9, %v211_v15  ;;  %v1096_v19 = vadd.f32 %v222_v11, %v210_v13  ;;  %v395_v14 = vpop.permute.xlu0 %394 }
 0x132   :  { %v232_v20 = vmax.f32 %v1090_v16, 0.0  ;;  %v233_v21 = vmax.f32 %v1092_v17, 0.0  ;;  %v235_v22 = vmax.f32 %v1094_v18, 0.0  ;;  %v234_v23 = vmax.f32 %v1096_v19, 0.0  ;;  %v411_v12 = vpop.permute.xlu1 %410  ;;  %v637_v16 = vld [vmem:[#allocation2 + $0x78] sm:$0xff] }
 0x134   :  { %v868_v24 = vpack.c.bf16 %v233_v21, %v232_v20  ;;  %v872_v25 = vpack.c.bf16 %v235_v22, %v234_v23 }
 0x136   :  { %869 = vmatprep.subr.bf16.mxu1 %v868_v24  ;;  %v415_v15 = vpop.permute.xlu1 %414 }
 0x137   :  { %871 = vmatpush3.bf16.msra.mxu1 %v868_v24  ;;  %v399_v24 = vpop.permute.xlu0 %398 }
 0x138   :  { %873 = vmatprep.subr.bf16.mxu1 %v872_v25 }
 0x13b   :  { %875 = vmatpush3.bf16.msra.mxu1 %v872_v25  ;;  %v403_v25 = vpop.permute.xlu1 %402  ;;  %v419_v32 = vpop.permute.xlu0 %418 }
 0x13e   :  { %831 = vmatmul.mubr.msk.f32.vlgmr.msra.gmra.mrb[0].mxu1 %vm257_vm1, %v238_v26 }
 0x13f   :  { %833 = vmatprep.mubr.msk.f32.mxu1 %vm257_vm1, %v239_v27  ;;  %v423_v31 = vpop.permute.xlu1 %422 }
 0x142   :  { %834 = vmatmul.mubr.msk.f32.gmra.mrb[2].mxu1 %vm257_vm1, %v240_v28 }
 0x211   :  { %v832_v35 = vpop.f32.mrb[0].mxu1 }
 0x212   :  { %v342_v36 = vadd.f32 %v832_v35, %v247_v33  ;;  %v336_v37 = vpop.f32.mrb[1].mxu1 }
 0x213   :  { %v337_v38 = vadd.f32 %v336_v37, %v243_v34 }
 0x215   :  { %v355_v40 = vadd.f32 %v342_v36, %v337_v38  ;;  %v835_v41 = vpop.f32.mrb[2].mxu1 }
 0x216   :  { %v346_v43 = vpop.f32.mrb[3].mxu1  ;;  %v352_v45 = vadd.f32 %v835_v41, %v255_v42 }
 0x217   :  { %v347_v44 = vadd.f32 %v346_v43, %v251_v39 }
 0x219   :  { %v356_v46 = vadd.f32 %v355_v40, %v347_v44 }
 0x21b   :  { %v357_v6 = vadd.f32 %v356_v46, %v352_v45 }
 0x21d   :  { %v358_v47 = vrot.slane %v357_v6, 4 }
 0x21f   :  { %v359_v48 = vadd.f32 %v358_v47, %v357_v6  ;;  %v435_v6 = vld [vmem:[#allocation2 + $0x48] sm:$0xff]  ;;  %v436_v47 = vld [vmem:[#allocation2 + $0x50] sm:$0xff] }
 0x221   :  { %v360_v49 = vrot.slane %v359_v48, 2 }
 0x223   :  { %v361_v50 = vadd.f32 %v360_v49, %v359_v48  ;;  %v437_v48 = vld [vmem:[#allocation2 + $0x58] sm:$0xff]  ;;  %v634_v49 = vld [vmem:[#allocation2 + $0x60] sm:$0xff] }
 0x224   :  { %858 = vmatprep.mubr.msk.f32.mxu1 %vm257_vm1, %v634_v49 }
 0x225   :  { %v362_v10 = vrot.slane %v361_v50, 1 }
 0x227   :  { %v363_v51 = vadd.f32 %v362_v10, %v361_v50  ;;  %v998_v50 = vmov 9   ;;  %v440_v10 = vpop.permute.xlu1 %439 }
 0x228   :  { %931 = vset.pattern.permute.xlu1 %v998_v50  ;;  %930 = vset.pattern.permute.xlu0 %v998_v50 }
 0x229   :  { %v364_v52 = vmul.f32 0.03125, %v363_v51  ;;  %643 = vperm.xlu1 %931, %v1057_v8   ;;  %639 = vperm.xlu0 %930, %v1045_v5   ;;  %v444_v51 = vpop.permute.xlu0 %443 }
 0x22b   :  { %v367_v53 = vsub.f32 %v347_v44, %v364_v52  ;;  %v368_v54 = vsub.f32 %v352_v45, %v364_v52  ;;  %v365_v55 = vsub.f32 %v337_v38, %v364_v52  ;;  %v366_v56 = vsub.f32 %v342_v36, %v364_v52 }
 0x22d   :  { %v369_v57 = vmul.f32 %v365_v55, %v365_v55  ;;  %v370_v58 = vmul.f32 %v366_v56, %v366_v56  ;;  %v371_v59 = vmul.f32 %v367_v53, %v367_v53  ;;  %v372_v61 = vmul.f32 %v368_v54, %v368_v54 }
 0x22f   :  { %v373_v60 = vadd.f32 %v370_v58, %v369_v57 }
 0x231   :  { %v374_v62 = vadd.f32 %v373_v60, %v371_v59 }
 0x233   :  { %v375_v63 = vadd.f32 %v374_v62, %v372_v61 }
 0x235   :  { %v376_v0 = vrot.slane %v375_v63, 4 }
 0x237   :  { %v377_v1 = vadd.f32 %v376_v0, %v375_v63 }
 0x239   :  { %v378_v2 = vrot.slane %v377_v1, 2 }
 0x23b   :  { %v379_v4 = vadd.f32 %v378_v2, %v377_v1 }
 0x23d   :  { %v380_v7 = vrot.slane %v379_v4, 1 }
 0x23f   :  { %v381_v9 = vadd.f32 %v380_v7, %v379_v4 }
 0x241   :  { %v382_v11 = vmul.f32 0.03125, %v381_v9 }
 0x243   :  { %v383_v13 = vadd.f32 1e-05, %v382_v11 }
 0x245   :  { %934 = vrsqrt.f32 %v383_v13 }
 0x24f   :  { %v935_v26 = vpop.eup %934 }
 0x250   :  { %v385_v27 = vmul.f32 %v935_v26, %v365_v55  ;;  %v386_v28 = vmul.f32 %v935_v26, %v366_v56  ;;  %v387_v29 = vmul.f32 %v935_v26, %v367_v53  ;;  %v388_v30 = vmul.f32 %v935_v26, %v368_v54  ;;  %v448_v53 = vpop.permute.xlu1 %447 }
 0x252   :  { %v405_v33 = vmul.f32 %v391_v3, %v385_v27  ;;  %v406_v34 = vmul.f32 %v395_v14, %v386_v28  ;;  %v407_v35 = vmul.f32 %v399_v24, %v387_v29  ;;  %v408_v36 = vmul.f32 %v403_v25, %v388_v30 }
 0x254   :  { %v425_v37 = vadd.f32 %v411_v12, %v405_v33  ;;  %v426_v38 = vadd.f32 %v415_v15, %v406_v34  ;;  %v428_v39 = vadd.f32 %v423_v31, %v408_v36  ;;  %v427_v40 = vadd.f32 %v419_v32, %v407_v35  ;;  %v452_v61 = vpop.permute.xlu1 %451 }
 0x256   :  { %v429_v41 = vmax.f32 %v425_v37, 0.0  ;;  %v430_v42 = vmax.f32 %v426_v38, 0.0  ;;  %v432_v43 = vmax.f32 %v428_v39, 0.0  ;;  %v431_v44 = vmax.f32 %v427_v40, 0.0  ;;  %v587_v40 = vpop.permute.xlu0 %586 }
 0x258   :  { %v880_v45 = vpack.c.bf16 %v432_v43, %v431_v44  ;;  %v876_v46 = vpack.c.bf16 %v430_v42, %v429_v41  ;;  %v591_v31 = vpop.permute.xlu1 %590 }
 0x25a   :  { %877 = vmatprep.subr.bf16.mxu0 %v876_v46  ;;  %v611_v42 = vpop.permute.xlu0 %610 }
 0x25b   :  { %879 = vmatpush3.bf16.msra.mxu0 %v876_v46 }
 0x25c   :  { %881 = vmatprep.subr.bf16.mxu0 %v880_v45  ;;  %v607_v36 = vpop.permute.xlu1 %606 }
 0x25f   :  { %883 = vmatpush3.bf16.msra.mxu0 %v880_v45 }
 0x260   :  { %v595_v39 = vpop.permute.xlu1 %594 }
 0x262   :  { %845 = vmatmul.mubr.msk.f32.vlgmr.msra.gmra.mrb[4].mxu0 %vm257_vm1, %v435_v6 }
 0x263   :  { %847 = vmatprep.mubr.msk.f32.mxu0 %vm257_vm1, %v436_v47 }
 0x264   :  { %v599_v41 = vpop.permute.xlu1 %598 }
 0x266   :  { %848 = vmatmul.mubr.msk.f32.gmra.mrb[6].mxu0 %vm257_vm1, %v437_v48  ;;  %v615_v48 = vpop.permute.xlu0 %614 }
 0x268   :  { %v619_v47 = vpop.permute.xlu1 %618 }
 0x2a8   :  { %v644_v17 = vpop.permute.xlu1 %643  ;;  %v640_v18 = vpop.permute.xlu0 %639 }
 0x335   :  { %v846_v52 = vpop.f32.mrb[4].mxu0 }
 0x336   :  { %v538_v54 = vadd.f32 %v846_v52, %v444_v51  ;;  %v532_v55 = vpop.f32.mrb[5].mxu0 }
 0x337   :  { %v533_v56 = vadd.f32 %v532_v55, %v440_v10 }
 0x339   :  { %v551_v57 = vadd.f32 %v538_v54, %v533_v56  ;;  %v849_v58 = vpop.f32.mrb[6].mxu0 }
 0x33a   :  { %v542_v59 = vpop.f32.mrb[7].mxu0  ;;  %v548_v62 = vadd.f32 %v849_v58, %v452_v61 }
 0x33b   :  { %v543_v60 = vadd.f32 %v542_v59, %v448_v53 }
 0x33d   :  { %v552_v63 = vadd.f32 %v551_v57, %v543_v60 }
 0x33f   :  { %v553_v0 = vadd.f32 %v552_v63, %v548_v62 }
 0x341   :  { %v554_v1 = vrot.slane %v553_v0, 4 }
 0x343   :  { %v555_v2 = vadd.f32 %v554_v1, %v553_v0 }
 0x345   :  { %v556_v8 = vrot.slane %v555_v2, 2 }
 0x347   :  { %v557_v3 = vadd.f32 %v556_v8, %v555_v2  ;;  %v635_v2 = vld [vmem:[#allocation2 + $0x68] sm:$0xff]  ;;  %v636_v8 = vld [vmem:[#allocation2 + $0x70] sm:$0xff] }
 0x349   :  { %v558_v5 = vrot.slane %v557_v3, 1 }
 0x34b   :  { %v559_v4 = vadd.f32 %v558_v5, %v557_v3 }
 0x34d   :  { %v560_v7 = vmul.f32 0.03125, %v559_v4 }
 0x34f   :  { %v563_v9 = vsub.f32 %v543_v60, %v560_v7  ;;  %v564_v11 = vsub.f32 %v548_v62, %v560_v7  ;;  %v561_v12 = vsub.f32 %v533_v56, %v560_v7  ;;  %v562_v13 = vsub.f32 %v538_v54, %v560_v7 }
 0x351   :  { %v565_v14 = vmul.f32 %v561_v12, %v561_v12  ;;  %v566_v15 = vmul.f32 %v562_v13, %v562_v13  ;;  %v567_v24 = vmul.f32 %v563_v9, %v563_v9  ;;  %v568_v26 = vmul.f32 %v564_v11, %v564_v11 }
 0x353   :  { %v569_v25 = vadd.f32 %v566_v15, %v565_v14 }
 0x355   :  { %v570_v27 = vadd.f32 %v569_v25, %v567_v24 }
 0x357   :  { %v571_v28 = vadd.f32 %v570_v27, %v568_v26 }
 0x359   :  { %v572_v29 = vrot.slane %v571_v28, 4 }
 0x35b   :  { %v573_v30 = vadd.f32 %v572_v29, %v571_v28 }
 0x35d   :  { %v574_v32 = vrot.slane %v573_v30, 2 }
 0x35f   :  { %v575_v33 = vadd.f32 %v574_v32, %v573_v30 }
 0x361   :  { %v576_v34 = vrot.slane %v575_v33, 1 }
 0x363   :  { %v577_v35 = vadd.f32 %v576_v34, %v575_v33 }
 0x365   :  { %v578_v37 = vmul.f32 0.03125, %v577_v35 }
 0x367   :  { %v579_v38 = vadd.f32 1e-05, %v578_v37 }
 0x369   :  { %936 = vrsqrt.f32 %v579_v38 }
 0x373   :  { %v937_v43 = vpop.eup %936 }
 0x374   :  { %v582_v44 = vmul.f32 %v937_v43, %v562_v13  ;;  %v583_v45 = vmul.f32 %v937_v43, %v563_v9  ;;  %v581_v46 = vmul.f32 %v937_v43, %v561_v12  ;;  %v584_v6 = vmul.f32 %v937_v43, %v564_v11 }
 0x376   :  { %v602_v49 = vmul.f32 %v591_v31, %v582_v44  ;;  %v603_v50 = vmul.f32 %v595_v39, %v583_v45  ;;  %v601_v10 = vmul.f32 %v587_v40, %v581_v46  ;;  %v604_v51 = vmul.f32 %v599_v41, %v584_v6 }
 0x378   :  { %v621_v52 = vadd.f32 %v607_v36, %v601_v10  ;;  %v622_v53 = vadd.f32 %v611_v42, %v602_v49  ;;  %v624_v54 = vadd.f32 %v619_v47, %v604_v51  ;;  %v623_v55 = vadd.f32 %v615_v48, %v603_v50 }
 0x37a   :  { %v625_v56 = vmax.f32 %v621_v52, 0.0  ;;  %v626_v57 = vmax.f32 %v622_v53, 0.0  ;;  %v628_v58 = vmax.f32 %v624_v54, 0.0  ;;  %v627_v59 = vmax.f32 %v623_v55, 0.0 }
 0x37c   :  { %v629_v60 = vadd.f32 %v625_v56, %v232_v20  ;;  %v630_v61 = vadd.f32 %v626_v57, %v233_v21  ;;  %v632_v62 = vadd.f32 %v628_v58, %v235_v22  ;;  %v631_v63 = vadd.f32 %v627_v59, %v234_v23 }
 0x37e   :  { %v884_v0 = vpack.c.bf16 %v630_v61, %v629_v60  ;;  %v888_v1 = vpack.c.bf16 %v632_v62, %v631_v63 }
 0x380   :  { %885 = vmatprep.subr.bf16.mxu1 %v884_v0 }
 0x381   :  { %887 = vmatpush3.bf16.msra.mxu1 %v884_v0 }
 0x382   :  { %889 = vmatprep.subr.bf16.mxu1 %v888_v1 }
 0x385   :  { %891 = vmatpush3.bf16.msra.mxu1 %v888_v1 }
 0x388   :  { %859 = vmatmul.mubr.msk.f32.vlgmr.msra.gmra.mrb[4].mxu1 %vm257_vm1, %v635_v2 }
 0x389   :  { %861 = vmatprep.mubr.msk.f32.mxu1 %vm257_vm1, %v636_v8 }
 0x38c   :  { %862 = vmatmul.mubr.msk.f32.gmra.mrb[6].mxu1 %vm257_vm1, %v637_v16 }
 0x45b   :  { %v860_v19 = vpop.f32.mrb[4].mxu1 }
 0x45c   :  { %v736_v20 = vadd.f32 %v860_v19, %v644_v17  ;;  %v730_v21 = vpop.f32.mrb[5].mxu1 }
 0x45d   :  { %v731_v22 = vadd.f32 %v730_v21, %v640_v18 }
 0x45e   :  { %748 = vst [vmem:[#allocation5 + $0x8] sm:$0xff] %v736_v20 }
 0x45f   :  { %747 = vst [vmem:[#allocation5] sm:$0xff] %v731_v22  ;;  %v863_v23 = vpop.f32.mrb[6].mxu1 }
 0x460   :  { %v740_v3 = vpop.f32.mrb[7].mxu1 }
 0x461   :  { %971 = shalt.err (!%p968_p12)
}
 0x462   :  { %s972_s13 = scalar_lea.hbm %s1161_s3, 256 }
 0x463   :  { %p973_p13 = scmp.ne.s32.totalorder %s1161_s3, %s972_s13  ;;  %p976_p0 = scmp.lt.u32.totalorder %s972_s13, %s1161_s3 }
 0x465   :  { %p978_p1 = pnand %p976_p0, %p973_p13 }
 0x467   :  { %981 = shalt.err (!%p978_p1)
}
 0x468   :  { %760 = dma.vmem_to_hbm [thread:$0]  %s755_s9, 256, %s1161_s3, [#allocation4], %s987_s22, %s987_s22, %s988_s23  }
 0x469   :  { %984 = dma.done.wait [#allocation4], 256  }
 0x46a   :  { %985 = vsyncadd [#allocation4], 4294967040 }
 0x46b   :  { %764 = vsyncpa [#allocation3], 1 }
 0x46c   :  { %765 = vsyncpa [#allocation4], 1 }

</bundles_post_ra>
